<compile_context>
chip_gen: v5e
topology: v5e:2x2
jax: 0.10.0
libtpu: 0.0.40
codegen_flags: <defaults>
</compile_context>

<pallas_src>
import functools

import jax
import jax.numpy as jnp
from jax.experimental import pallas as pl
from jax.experimental.pallas import tpu as pltpu


def _sepconv_kernel(x_ref, wdw_ref, bdw_ref, wpw_ref, bpw_ref, o_ref,
                    *, W, KH, KW, Cin, Cout, B, HW):
    # x_ref:   (B*Cin, HW + s_max)  B images, channels-first, spatial on lanes
    # wdw_ref: (B*Cin, KH*KW)       depthwise weights, tiled per image
    # bdw_ref: (B*Cin, 1)           depthwise bias, tiled per image
    # wpw_ref: (Cout, Cin)          pointwise weights (PyTorch orientation)
    # bpw_ref: (Cout, 1)            pointwise bias
    # o_ref:   (B*Cout, HW)         lane-dense output slab (HW = H*W, mult of 128)
    x = x_ref[...]                                       # native dtype
    wdw = wdw_ref[...].astype(jnp.float32)               # cast once, pre-loop

    # Depthwise 3x3, valid padding, stride 1: shifted-window FMAs on the
    # flattened lane axis.  Flat position p = i*W + j of acc holds the output
    # for pixel (i, j); positions with i >= Ho or j >= Wo are junk (stripped
    # in the wrapper) but stay in-bounds thanks to the s_max lane padding.
    acc = jnp.zeros((B * Cin, HW), jnp.float32)
    for kh in range(KH):
        for kw in range(KW):
            s = kh * W + kw                              # flat lane shift
            t = kh * KW + kw                             # weight tap index
            win = x[:, s:s + HW].astype(jnp.float32)     # (B*Cin, HW)
            acc = acc + win * wdw[:, t:t + 1]            # lane-broadcast weight

    # Depthwise bias + ReLU (bias lane-broadcast per row).
    acc = jnp.maximum(acc + bdw_ref[...].astype(jnp.float32), 0.0)

    # Pointwise 1x1 conv on the VPU: Cin broadcast-FMA steps per image.
    # (Switch to an MXU jnp.dot only if Cin/Cout grow to ~64+.)
    wpw = wpw_ref[...].astype(jnp.float32)                           # (Cout, Cin)
    bpw_b = jnp.broadcast_to(bpw_ref[...].astype(jnp.float32),
                             (Cout, HW))                             # hoisted
    outs = []
    for b in range(B):
        y = bpw_b
        for ci in range(Cin):
            row = acc[b * Cin + ci:b * Cin + ci + 1, :]              # (1, HW)
            y = y + row * wpw[:, ci:ci + 1]                          # (Cout, HW)
        outs.append(y)
    o_ref[...] = jnp.concatenate(outs, axis=0).astype(o_ref.dtype)   # one dense store


def sepconv2d_pallas(x, w_dw, b_dw, w_pw, b_pw):
    """Fused SepConv2d.

    x:    (N, Cin, H, W)  NCHW, like the PyTorch module.
    w_dw: (Cin, KH, KW)   == spatialConv.weight.squeeze(1)
    b_dw: (Cin,)          == spatialConv.bias
    w_pw: (Cout, Cin)     == pointConv.weight.squeeze(-1).squeeze(-1)
    b_pw: (Cout,)         == pointConv.bias
    returns (N, Cout, Ho, Wo) NCHW with Ho = H-KH+1, Wo = W-KW+1.
    """
    N, Cin, H, W = x.shape
    _, KH, KW = w_dw.shape
    Cout = w_pw.shape[0]
    Ho, Wo = H - KH + 1, W - KW + 1
    HW = H * W
    s_max = (KH - 1) * W + (KW - 1)      # max flat window shift
    HWp = HW + s_max                     # padded lane width of the input

    # Images per grid step: fill the 8 f32 sublanes when Cin is small.
    B = max(1, 8 // Cin) if Cin < 8 else 1
    B = min(B, N)
    Ng = -(-N // B)                      # number of image groups (grid steps)
    if Ng > 1 and (B * Cin) % 8 != 0:    # keep multi-step blocks sublane-aligned
        B, Ng = N, 1
    Npad = Ng * B

    # Free, contiguous re-layouts at the wrapper boundary.
    if Npad != N:
        x = jnp.pad(x, ((0, Npad - N), (0, 0), (0, 0), (0, 0)))
    x_flat = x.reshape(Npad, Cin, HW)
    x_flat = jnp.pad(x_flat, ((0, 0), (0, 0), (0, s_max)))   # lane padding
    x_pack = x_flat.reshape(Npad * Cin, HWp)

    wdw_k = jnp.tile(w_dw.reshape(Cin, KH * KW), (B, 1))     # (B*Cin, KH*KW)
    bdw_k = jnp.tile(b_dw.reshape(Cin, 1), (B, 1))           # (B*Cin, 1)
    bpw_k = b_pw.reshape(Cout, 1)                            # (Cout, 1)

    kernel = functools.partial(_sepconv_kernel, W=W, KH=KH, KW=KW,
                               Cin=Cin, Cout=Cout, B=B, HW=HW)

    out_flat = pl.pallas_call(
        kernel,
        out_shape=jax.ShapeDtypeStruct((Npad * Cout, HW), x.dtype),
        grid=(Ng,),
        in_specs=[
            pl.BlockSpec((B * Cin, HWp), lambda g: (g, 0)),
            pl.BlockSpec((B * Cin, KH * KW), lambda g: (0, 0)),
            pl.BlockSpec((B * Cin, 1), lambda g: (0, 0)),
            pl.BlockSpec((Cout, Cin), lambda g: (0, 0)),
            pl.BlockSpec((Cout, 1), lambda g: (0, 0)),
        ],
        out_specs=pl.BlockSpec((B * Cout, HW), lambda g: (g, 0)),
        compiler_params=pltpu.CompilerParams(
            dimension_semantics=("arbitrary",)),
    )(x_pack, wdw_k, bdw_k, w_pw, bpw_k)

    # Epilogue: contiguous reshape of the lane-dense slab + one slice.
    out = out_flat.reshape(Npad, Cout, H, W)[:N, :, :Ho, :Wo]
    return out                                               # NCHW


def sepconv2d_reference(x, w_dw, b_dw, w_pw, b_pw):
    """Pure-JAX reference (same math, no Pallas), NCHW."""
    N, Cin, H, W = x.shape
    _, KH, KW = w_dw.shape
    Ho, Wo = H - KH + 1, W - KW + 1
    xf = x.astype(jnp.float32)
    acc = jnp.zeros((N, Cin, Ho, Wo), jnp.float32)
    for kh in range(KH):
        for kw in range(KW):
            wk = w_dw[:, kh, kw].astype(jnp.float32)[None, :, None, None]
            acc = acc + xf[:, :, kh:kh + Ho, kw:kw + Wo] * wk
    acc = jnp.maximum(acc + b_dw.astype(jnp.float32)[None, :, None, None], 0.0)
    y = jnp.einsum('nchw,dc->ndhw', acc, w_pw.astype(jnp.float32))
    y = y + b_pw.astype(jnp.float32)[None, :, None, None]
    return y.astype(x.dtype)


if __name__ == "__main__":
    # Module config: in_channels=4, out_channels=8, kernel_size=3, stride=1,
    # padding=0, dilation=1, bias=True, depth_multiplier=1.
    N, Cin, H, W = 2, 4, 16, 16
    Cout, KH, KW = 8, 3, 3

    key = jax.random.PRNGKey(0)
    k_x, k_wdw, k_bdw, k_wpw, k_bpw = jax.random.split(key, 5)

    # PyTorch-native NCHW input.
    x = jax.random.normal(k_x, (N, Cin, H, W), dtype=jnp.float32)

    # Parameters map 1:1 to the PyTorch module state dict:
    #   spatialConv.weight (Cin,1,KH,KW)  -> w_dw (Cin,KH,KW)  (squeeze dim 1)
    #   spatialConv.bias   (Cin,)         -> b_dw (Cin,)
    #   pointConv.weight   (Cout,Cin,1,1) -> w_pw (Cout,Cin)   (squeeze k dims)
    #   pointConv.bias     (Cout,)        -> b_pw (Cout,)
    w_dw = jax.random.normal(k_wdw, (Cin, KH, KW), dtype=jnp.float32) * 0.1
    b_dw = jax.random.normal(k_bdw, (Cin,), dtype=jnp.float32) * 0.1
    w_pw = jax.random.normal(k_wpw, (Cout, Cin), dtype=jnp.float32) * 0.1
    b_pw = jax.random.normal(k_bpw, (Cout,), dtype=jnp.float32) * 0.1

    out = sepconv2d_pallas(x, w_dw, b_dw, w_pw, b_pw)
    out = jax.block_until_ready(out)

    ref = sepconv2d_reference(x, w_dw, b_dw, w_pw, b_pw)
    assert out.shape == (N, Cout, H - KH + 1, W - KW + 1)
    assert jnp.allclose(out, ref, atol=1e-4, rtol=1e-4), \
        float(jnp.max(jnp.abs(out - ref)))

    print("KERNEL_OK")
</pallas_src>

<mosaic_0001>
module attributes {stable_mosaic.version = 11 : i64} {
  func.func @_sepconv_kernel(%arg0: i32, %arg1: memref<8x290xf32, #tpu.memory_space<vmem>>, %arg2: memref<8x9xf32, #tpu.memory_space<vmem>>, %arg3: memref<8x1xf32, #tpu.memory_space<vmem>>, %arg4: memref<8x4xf32, #tpu.memory_space<vmem>>, %arg5: memref<8x1xf32, #tpu.memory_space<vmem>>, %arg6: memref<16x256xf32, #tpu.memory_space<vmem>>) attributes {dimension_semantics = [#tpu.dimension_semantics<arbitrary>], iteration_bounds = array<i64: 1>, scalar_prefetch = 0 : i64, scratch_operands = 0 : i64, tpu.core_type = #tpu.core_type<tc>, window_params = [{transform_indices = @transform_0, window_bounds = array<i64: 8, 290>}, {pipeline_mode = #tpu.pipeline_mode<synchronous>, transform_indices = @transform_1, window_bounds = array<i64: 8, 9>}, {pipeline_mode = #tpu.pipeline_mode<synchronous>, transform_indices = @transform_2, window_bounds = array<i64: 8, 1>}, {pipeline_mode = #tpu.pipeline_mode<synchronous>, transform_indices = @transform_3, window_bounds = array<i64: 8, 4>}, {pipeline_mode = #tpu.pipeline_mode<synchronous>, transform_indices = @transform_4, window_bounds = array<i64: 8, 1>}, {transform_indices = @transform_5, window_bounds = array<i64: 16, 256>}]} {
    %c0 = arith.constant 0 : index
    %c0_0 = arith.constant 0 : index
    %0 = vector.load %arg1[%c0, %c0_0] : memref<8x290xf32, #tpu.memory_space<vmem>>, vector<8x290xf32>
    %c0_1 = arith.constant 0 : index
    %c0_2 = arith.constant 0 : index
    %1 = vector.load %arg2[%c0_1, %c0_2] : memref<8x9xf32, #tpu.memory_space<vmem>>, vector<8x9xf32>
    %cst = arith.constant 0.000000e+00 : f32
    %2 = vector.broadcast %cst : f32 to vector<8x256xf32>
    %3 = vector.extract_strided_slice %0 {offsets = [0, 0], sizes = [8, 256], strides = [1, 1]} : vector<8x290xf32> to vector<8x256xf32>
    %4 = vector.extract_strided_slice %1 {offsets = [0, 0], sizes = [8, 1], strides = [1, 1]} : vector<8x9xf32> to vector<8x1xf32>
    %5 = vector.broadcast %4 : vector<8x1xf32> to vector<8x256xf32>
    %6 = arith.mulf %3, %5 : vector<8x256xf32>
    %7 = arith.addf %2, %6 : vector<8x256xf32>
    %8 = vector.extract_strided_slice %0 {offsets = [0, 1], sizes = [8, 256], strides = [1, 1]} : vector<8x290xf32> to vector<8x256xf32>
    %9 = vector.extract_strided_slice %1 {offsets = [0, 1], sizes = [8, 1], strides = [1, 1]} : vector<8x9xf32> to vector<8x1xf32>
    %10 = vector.broadcast %9 : vector<8x1xf32> to vector<8x256xf32>
    %11 = arith.mulf %8, %10 : vector<8x256xf32>
    %12 = arith.addf %7, %11 : vector<8x256xf32>
    %13 = vector.extract_strided_slice %0 {offsets = [0, 2], sizes = [8, 256], strides = [1, 1]} : vector<8x290xf32> to vector<8x256xf32>
    %14 = vector.extract_strided_slice %1 {offsets = [0, 2], sizes = [8, 1], strides = [1, 1]} : vector<8x9xf32> to vector<8x1xf32>
    %15 = vector.broadcast %14 : vector<8x1xf32> to vector<8x256xf32>
    %16 = arith.mulf %13, %15 : vector<8x256xf32>
    %17 = arith.addf %12, %16 : vector<8x256xf32>
    %18 = vector.extract_strided_slice %0 {offsets = [0, 16], sizes = [8, 256], strides = [1, 1]} : vector<8x290xf32> to vector<8x256xf32>
    %19 = vector.extract_strided_slice %1 {offsets = [0, 3], sizes = [8, 1], strides = [1, 1]} : vector<8x9xf32> to vector<8x1xf32>
    %20 = vector.broadcast %19 : vector<8x1xf32> to vector<8x256xf32>
    %21 = arith.mulf %18, %20 : vector<8x256xf32>
    %22 = arith.addf %17, %21 : vector<8x256xf32>
    %23 = vector.extract_strided_slice %0 {offsets = [0, 17], sizes = [8, 256], strides = [1, 1]} : vector<8x290xf32> to vector<8x256xf32>
    %24 = vector.extract_strided_slice %1 {offsets = [0, 4], sizes = [8, 1], strides = [1, 1]} : vector<8x9xf32> to vector<8x1xf32>
    %25 = vector.broadcast %24 : vector<8x1xf32> to vector<8x256xf32>
    %26 = arith.mulf %23, %25 : vector<8x256xf32>
    %27 = arith.addf %22, %26 : vector<8x256xf32>
    %28 = vector.extract_strided_slice %0 {offsets = [0, 18], sizes = [8, 256], strides = [1, 1]} : vector<8x290xf32> to vector<8x256xf32>
    %29 = vector.extract_strided_slice %1 {offsets = [0, 5], sizes = [8, 1], strides = [1, 1]} : vector<8x9xf32> to vector<8x1xf32>
    %30 = vector.broadcast %29 : vector<8x1xf32> to vector<8x256xf32>
    %31 = arith.mulf %28, %30 : vector<8x256xf32>
    %32 = arith.addf %27, %31 : vector<8x256xf32>
    %33 = vector.extract_strided_slice %0 {offsets = [0, 32], sizes = [8, 256], strides = [1, 1]} : vector<8x290xf32> to vector<8x256xf32>
    %34 = vector.extract_strided_slice %1 {offsets = [0, 6], sizes = [8, 1], strides = [1, 1]} : vector<8x9xf32> to vector<8x1xf32>
    %35 = vector.broadcast %34 : vector<8x1xf32> to vector<8x256xf32>
    %36 = arith.mulf %33, %35 : vector<8x256xf32>
    %37 = arith.addf %32, %36 : vector<8x256xf32>
    %38 = vector.extract_strided_slice %0 {offsets = [0, 33], sizes = [8, 256], strides = [1, 1]} : vector<8x290xf32> to vector<8x256xf32>
    %39 = vector.extract_strided_slice %1 {offsets = [0, 7], sizes = [8, 1], strides = [1, 1]} : vector<8x9xf32> to vector<8x1xf32>
    %40 = vector.broadcast %39 : vector<8x1xf32> to vector<8x256xf32>
    %41 = arith.mulf %38, %40 : vector<8x256xf32>
    %42 = arith.addf %37, %41 : vector<8x256xf32>
    %43 = vector.extract_strided_slice %0 {offsets = [0, 34], sizes = [8, 256], strides = [1, 1]} : vector<8x290xf32> to vector<8x256xf32>
    %44 = vector.extract_strided_slice %1 {offsets = [0, 8], sizes = [8, 1], strides = [1, 1]} : vector<8x9xf32> to vector<8x1xf32>
    %45 = vector.broadcast %44 : vector<8x1xf32> to vector<8x256xf32>
    %46 = arith.mulf %43, %45 : vector<8x256xf32>
    %47 = arith.addf %42, %46 : vector<8x256xf32>
    %c0_3 = arith.constant 0 : index
    %c0_4 = arith.constant 0 : index
    %48 = vector.load %arg3[%c0_3, %c0_4] : memref<8x1xf32, #tpu.memory_space<vmem>>, vector<8x1xf32>
    %49 = vector.broadcast %48 : vector<8x1xf32> to vector<8x256xf32>
    %50 = arith.addf %47, %49 : vector<8x256xf32>
    %cst_5 = arith.constant 0.000000e+00 : f32
    %51 = vector.broadcast %cst_5 : f32 to vector<8x256xf32>
    %52 = arith.maximumf %50, %51 : vector<8x256xf32>
    %c0_6 = arith.constant 0 : index
    %c0_7 = arith.constant 0 : index
    %53 = vector.load %arg4[%c0_6, %c0_7] : memref<8x4xf32, #tpu.memory_space<vmem>>, vector<8x4xf32>
    %c0_8 = arith.constant 0 : index
    %c0_9 = arith.constant 0 : index
    %54 = vector.load %arg5[%c0_8, %c0_9] : memref<8x1xf32, #tpu.memory_space<vmem>>, vector<8x1xf32>
    %55 = vector.shape_cast %54 : vector<8x1xf32> to vector<8x1xf32>
    %56 = vector.broadcast %55 : vector<8x1xf32> to vector<8x256xf32>
    %57 = vector.extract_strided_slice %52 {offsets = [0, 0], sizes = [1, 256], strides = [1, 1]} : vector<8x256xf32> to vector<1x256xf32>
    %58 = vector.extract_strided_slice %53 {offsets = [0, 0], sizes = [8, 1], strides = [1, 1]} : vector<8x4xf32> to vector<8x1xf32>
    %59 = vector.broadcast %57 : vector<1x256xf32> to vector<8x256xf32>
    %60 = vector.broadcast %58 : vector<8x1xf32> to vector<8x256xf32>
    %61 = arith.mulf %59, %60 : vector<8x256xf32>
    %62 = arith.addf %56, %61 : vector<8x256xf32>
    %63 = vector.extract_strided_slice %52 {offsets = [1, 0], sizes = [1, 256], strides = [1, 1]} : vector<8x256xf32> to vector<1x256xf32>
    %64 = vector.extract_strided_slice %53 {offsets = [0, 1], sizes = [8, 1], strides = [1, 1]} : vector<8x4xf32> to vector<8x1xf32>
    %65 = vector.broadcast %63 : vector<1x256xf32> to vector<8x256xf32>
    %66 = vector.broadcast %64 : vector<8x1xf32> to vector<8x256xf32>
    %67 = arith.mulf %65, %66 : vector<8x256xf32>
    %68 = arith.addf %62, %67 : vector<8x256xf32>
    %69 = vector.extract_strided_slice %52 {offsets = [2, 0], sizes = [1, 256], strides = [1, 1]} : vector<8x256xf32> to vector<1x256xf32>
    %70 = vector.extract_strided_slice %53 {offsets = [0, 2], sizes = [8, 1], strides = [1, 1]} : vector<8x4xf32> to vector<8x1xf32>
    %71 = vector.broadcast %69 : vector<1x256xf32> to vector<8x256xf32>
    %72 = vector.broadcast %70 : vector<8x1xf32> to vector<8x256xf32>
    %73 = arith.mulf %71, %72 : vector<8x256xf32>
    %74 = arith.addf %68, %73 : vector<8x256xf32>
    %75 = vector.extract_strided_slice %52 {offsets = [3, 0], sizes = [1, 256], strides = [1, 1]} : vector<8x256xf32> to vector<1x256xf32>
    %76 = vector.extract_strided_slice %53 {offsets = [0, 3], sizes = [8, 1], strides = [1, 1]} : vector<8x4xf32> to vector<8x1xf32>
    %77 = vector.broadcast %75 : vector<1x256xf32> to vector<8x256xf32>
    %78 = vector.broadcast %76 : vector<8x1xf32> to vector<8x256xf32>
    %79 = arith.mulf %77, %78 : vector<8x256xf32>
    %80 = arith.addf %74, %79 : vector<8x256xf32>
    %81 = vector.extract_strided_slice %52 {offsets = [4, 0], sizes = [1, 256], strides = [1, 1]} : vector<8x256xf32> to vector<1x256xf32>
    %82 = vector.extract_strided_slice %53 {offsets = [0, 0], sizes = [8, 1], strides = [1, 1]} : vector<8x4xf32> to vector<8x1xf32>
    %83 = vector.broadcast %81 : vector<1x256xf32> to vector<8x256xf32>
    %84 = vector.broadcast %82 : vector<8x1xf32> to vector<8x256xf32>
    %85 = arith.mulf %83, %84 : vector<8x256xf32>
    %86 = arith.addf %56, %85 : vector<8x256xf32>
    %87 = vector.extract_strided_slice %52 {offsets = [5, 0], sizes = [1, 256], strides = [1, 1]} : vector<8x256xf32> to vector<1x256xf32>
    %88 = vector.extract_strided_slice %53 {offsets = [0, 1], sizes = [8, 1], strides = [1, 1]} : vector<8x4xf32> to vector<8x1xf32>
    %89 = vector.broadcast %87 : vector<1x256xf32> to vector<8x256xf32>
    %90 = vector.broadcast %88 : vector<8x1xf32> to vector<8x256xf32>
    %91 = arith.mulf %89, %90 : vector<8x256xf32>
    %92 = arith.addf %86, %91 : vector<8x256xf32>
    %93 = vector.extract_strided_slice %52 {offsets = [6, 0], sizes = [1, 256], strides = [1, 1]} : vector<8x256xf32> to vector<1x256xf32>
    %94 = vector.extract_strided_slice %53 {offsets = [0, 2], sizes = [8, 1], strides = [1, 1]} : vector<8x4xf32> to vector<8x1xf32>
    %95 = vector.broadcast %93 : vector<1x256xf32> to vector<8x256xf32>
    %96 = vector.broadcast %94 : vector<8x1xf32> to vector<8x256xf32>
    %97 = arith.mulf %95, %96 : vector<8x256xf32>
    %98 = arith.addf %92, %97 : vector<8x256xf32>
    %99 = vector.extract_strided_slice %52 {offsets = [7, 0], sizes = [1, 256], strides = [1, 1]} : vector<8x256xf32> to vector<1x256xf32>
    %100 = vector.extract_strided_slice %53 {offsets = [0, 3], sizes = [8, 1], strides = [1, 1]} : vector<8x4xf32> to vector<8x1xf32>
    %101 = vector.broadcast %99 : vector<1x256xf32> to vector<8x256xf32>
    %102 = vector.broadcast %100 : vector<8x1xf32> to vector<8x256xf32>
    %103 = arith.mulf %101, %102 : vector<8x256xf32>
    %104 = arith.addf %98, %103 : vector<8x256xf32>
    %105 = tpu.concatenate %80, %104 in 0 : vector<8x256xf32>, vector<8x256xf32> -> vector<16x256xf32>
    %c0_10 = arith.constant 0 : index
    %c0_11 = arith.constant 0 : index
    %106 = vector.load %arg6[%c0_10, %c0_11] : memref<16x256xf32, #tpu.memory_space<vmem>>, vector<16x256xf32>
    tpu.vector_store %arg6[%c0_10, %c0_11], %105 {strides = array<i32>} : memref<16x256xf32, #tpu.memory_space<vmem>>, vector<16x256xf32>,
    return
  }
  func.func @transform_0(%arg0: i32) -> (i32, i32) {
    %c0_i32 = arith.constant 0 : i32
    %c0_i32_0 = arith.constant 0 : i32
    return %arg0, %c0_i32 : i32, i32
  }
  func.func @transform_1(%arg0: i32) -> (i32, i32) {
    %c0_i32 = arith.constant 0 : i32
    %c0_i32_0 = arith.constant 0 : i32
    %c0_i32_1 = arith.constant 0 : i32
    return %c0_i32, %c0_i32_0 : i32, i32
  }
  func.func @transform_2(%arg0: i32) -> (i32, i32) {
    %c0_i32 = arith.constant 0 : i32
    %c0_i32_0 = arith.constant 0 : i32
    %c0_i32_1 = arith.constant 0 : i32
    return %c0_i32, %c0_i32_0 : i32, i32
  }
  func.func @transform_3(%arg0: i32) -> (i32, i32) {
    %c0_i32 = arith.constant 0 : i32
    %c0_i32_0 = arith.constant 0 : i32
    %c0_i32_1 = arith.constant 0 : i32
    return %c0_i32, %c0_i32_0 : i32, i32
  }
  func.func @transform_4(%arg0: i32) -> (i32, i32) {
    %c0_i32 = arith.constant 0 : i32
    %c0_i32_0 = arith.constant 0 : i32
    %c0_i32_1 = arith.constant 0 : i32
    return %c0_i32, %c0_i32_0 : i32, i32
  }
  func.func @transform_5(%arg0: i32) -> (i32, i32) {
    %c0_i32 = arith.constant 0 : i32
    %c0_i32_0 = arith.constant 0 : i32
    return %arg0, %c0_i32 : i32, i32
  }
}

</mosaic_0001>

<bundles_post_ra>
// kernel: tpu_custom_call.1
= control target key start
LH: loop header
LB: loop body
LE: loop exit
PB: predicated region body
PF: predicated region fallthrough
CT: control target
= control target key end

     0   :  { %10 = vsyncpa [#allocation3], 0  ;;  %s549_s0 = inlined_call_operand.hbm [shape: f32[8,290], index: 0, kind: input, shape index: {}]   ;;  %s550_s1 = inlined_call_operand.vmem [shape: f32[8,9], index: 1, kind: input, shape index: {}]   ;;  %s551_s2 = inlined_call_operand.vmem [shape: f32[8,1], index: 2, kind: input, shape index: {}]   ;;  %s552_s3 = inlined_call_operand.vmem [shape: f32[8,4], index: 3, kind: input, shape index: {}]   ;;  %s553_s4 = inlined_call_operand.vmem [shape: f32[8,1], index: 4, kind: input, shape index: {}]   ;;  %s554_s5 = inlined_call_operand.hbm [shape: f32[16,256], index: 5, kind: output, shape index: {}]  }
   0x1   :  { %11 = vsyncpa [#allocation4], 0  ;;  %s17_s20 = sshll.u32 %s549_s0, 4  ;;  %s425_s21 = smov [#allocation2]   ;;  %s18_s20 = int_to_ptr.hbm [resolvable:$true] %s17_s20 }
   0x2   :  { %s19_s22 = sshll.u32 %s425_s21, 4  ;;  %s20_s22 = int_to_ptr.vmem [resolvable:$true] %s19_s22 }
   0x3   :  { %22 = dma.hbm_to_vmem [thread:$0]  %s18_s20, 384, %s20_s22, [#allocation3]  }
   0x4   :  { %421 = dma.done.wait [#allocation3], 384  }
   0x5   :  { %422 = vsyncadd [#allocation3], 4294966912  ;;  %v426_v0 = vmov 3   ;;  %v427_v1 = vmov 1   ;;  %v428_v2 = vmov 2   ;;  %v38_v3 = vld [vmem:[%s550_s1] sm:$0xff] }
   0x6   :  { %360 = vset.pattern.permute.xlu1 %v426_v0  ;;  %358 = vset.pattern.permute.xlu0 %v427_v1  ;;  %v429_v4 = vmov 5   ;;  %v430_v5 = vmov 6   ;;  %v431_v6 = vmov 4   ;;  %v432_v7 = vmov 8   ;;  %v485_v10 = vld [vmem:[#allocation2 + $0x10] sm:$0xff]  ;;  %s435_s0 = smov 126  }
   0x7   :  { %359 = vset.pattern.permute.xlu2 %v428_v2  ;;  %95 = vperm.xlu1 %360, %v38_v3   ;;  %v433_v8 = vmov 0   ;;  %v434_v9 = vmov 7   ;;  %v488_v13 = vld [vmem:[#allocation2] sm:$0xff]  ;;  %v490_v14 = vld [vmem:[#allocation2 + $0x8] sm:$0xff]  ;;  %s436_s1 = smov 112   ;;  %s437_s25 = smov 127  }
   0x8   :  { %49 = vperm.xlu0 %358, %v38_v3   ;;  %72 = vperm.xlu2 %359, %v38_v3   ;;  %s438_s26 = smov 111   ;;  %s439_s27 = smov 110   ;;  %v242_v42 = vld [vmem:[%s552_s3] sm:$0xff]  ;;  %vm64_vm0 = vcmask 1039360   ;;  %vm87_vm1 = vcmask 1031168   ;;  %vm110_vm2 = vcmask 916480  }
   0x9   :  { %s440_s28 = smov 96   ;;  %s441_s29 = smov 95   ;;  %v232_v46 = vld [vmem:[%s551_s2] sm:$0xff]  ;;  %vm133_vm3 = vcmask 908288   ;;  %vm156_vm4 = vcmask 900096   ;;  %vm179_vm5 = vcmask 785408  }
   0xa   :  { %s442_s30 = smov 94   ;;  %v243_v47 = vld [vmem:[%s553_s4] sm:$0xff]  ;;  %vm202_vm6 = vcmask 777216   ;;  %vm225_vm7 = vcmask 769024   ;;  %s443_s2 = smov [#allocation5]  }
   0xb   :  { %s322_s4 = sshll.u32 %s443_s2, 4  ;;  %s324_s13 = sshll.u32 %s554_s5, 4  ;;  %s323_s4 = int_to_ptr.vmem [resolvable:$true] %s322_s4  ;;  %s325_s13 = int_to_ptr.hbm [resolvable:$true] %s324_s13 }
   0xc   :  { %s444_s14 = smov 256   ;;  %s445_s15 = smov 16  }
   0xf   :  { %364 = vset.pattern.permute.xlu1 %v430_v5 }
  0x10   :  { %362 = vset.pattern.permute.xlu0 %v429_v4  ;;  %164 = vperm.xlu1 %364, %v38_v3  }
  0x11   :  { %141 = vperm.xlu0 %362, %v38_v3   ;;  %361 = vset.pattern.permute.xlu2 %v431_v6 }
  0x12   :  { %118 = vperm.xlu2 %361, %v38_v3  }
  0x18   :  { %366 = vset.pattern.permute.xlu1 %v432_v7 }
  0x19   :  { %363 = vset.pattern.permute.xlu0 %v433_v8  ;;  %210 = vperm.xlu1 %366, %v38_v3  }
  0x1a   :  { %41 = vperm.xlu0 %363, %v38_v3   ;;  %365 = vset.pattern.permute.xlu2 %v434_v9 }
  0x1b   :  { %187 = vperm.xlu2 %365, %v38_v3  }
  0x21   :  { %368 = vset.pattern.permute.xlu1 %v433_v8 }
  0x23   :  { %367 = vset.pattern.permute.xlu2 %v433_v8 }
  0x62   :  { %v73_v11 = vpop.permute.xlu2 %72 }
  0x63   :  { %v77_v12 = vmul.f32 %v73_v11, %v485_v10  ;;  %v76_v22 = vmul.f32 %v73_v11, %v490_v14  ;;  %v75_v25 = vmul.f32 %v73_v11, %v488_v13 }
  0x65   :  { %85 = vrot.lane.b32.xlu0 %v77_v12, %s435_s0 }
  0x6c   :  { %v119_v20 = vpop.permute.xlu2 %118 }
  0x6d   :  { %v122_v21 = vmul.f32 %v119_v20, %v490_v14  ;;  %v121_v31 = vmul.f32 %v119_v20, %v488_v13  ;;  %v123_v33 = vmul.f32 %v119_v20, %v485_v10 }
  0x75   :  { %v188_v32 = vpop.permute.xlu2 %187 }
  0x76   :  { %v191_v34 = vmul.f32 %v188_v32, %v490_v14  ;;  %v190_v41 = vmul.f32 %v188_v32, %v488_v13  ;;  %v192_v43 = vmul.f32 %v188_v32, %v485_v10 }
  0x79   :  { %v96_v15 = vpop.permute.xlu1 %95 }
  0x7a   :  { %v50_v16 = vpop.permute.xlu0 %49  ;;  %v99_v17 = vmul.f32 %v96_v15, %v490_v14  ;;  %v98_v27 = vmul.f32 %v96_v15, %v488_v13  ;;  %v100_v29 = vmul.f32 %v96_v15, %v485_v10 }
  0x7b   :  { %v52_v18 = vmul.f32 %v50_v16, %v488_v13  ;;  %v54_v19 = vmul.f32 %v50_v16, %v485_v10  ;;  %v53_v23 = vmul.f32 %v50_v16, %v490_v14 }
  0x7c   :  { %106 = vrot.lane.b32.xlu0 %v99_v17, %s436_s1 }
  0x7d   :  { %58 = vrot.lane.b32.xlu1 %v52_v18, %s437_s25  ;;  %62 = vrot.lane.b32.xlu2 %v54_v19, %s437_s25 }
  0x82   :  { %v165_v28 = vpop.permute.xlu1 %164 }
  0x83   :  { %v142_v24 = vpop.permute.xlu0 %141  ;;  %v168_v30 = vmul.f32 %v165_v28, %v490_v14  ;;  %v167_v39 = vmul.f32 %v165_v28, %v488_v13  ;;  %v169_v40 = vmul.f32 %v165_v28, %v485_v10 }
  0x84   :  { %129 = vrot.lane.b32.xlu0 %v122_v21, %s438_s26  ;;  %v145_v26 = vmul.f32 %v142_v24, %v490_v14  ;;  %v144_v35 = vmul.f32 %v142_v24, %v488_v13  ;;  %v146_v37 = vmul.f32 %v142_v24, %v485_v10 }
  0x85   :  { %60 = vrot.lane.b32.xlu1 %v53_v23, %s437_s25  ;;  %83 = vrot.lane.b32.xlu2 %v76_v22, %s435_s0 }
  0x8b   :  { %v211_v36 = vpop.permute.xlu1 %210 }
  0x8c   :  { %152 = vrot.lane.b32.xlu0 %v145_v26, %s439_s27  ;;  %v214_v38 = vmul.f32 %v211_v36, %v490_v14  ;;  %v213_v44 = vmul.f32 %v211_v36, %v488_v13  ;;  %v215_v45 = vmul.f32 %v211_v36, %v485_v10  ;;  %v42_v49 = vpop.permute.xlu0 %41 }
  0x8d   :  { %81 = vrot.lane.b32.xlu1 %v75_v25, %s435_s0  ;;  %104 = vrot.lane.b32.xlu2 %v98_v27, %s436_s1  ;;  %v45_v11 = vmul.f32 %v42_v49, %v490_v14 }
  0x94   :  { %175 = vrot.lane.b32.xlu0 %v168_v30, %s440_s28 }
  0x95   :  { %108 = vrot.lane.b32.xlu1 %v100_v29, %s436_s1  ;;  %127 = vrot.lane.b32.xlu2 %v121_v31, %s438_s26 }
  0x9c   :  { %198 = vrot.lane.b32.xlu0 %v191_v34, %s441_s29 }
  0x9d   :  { %131 = vrot.lane.b32.xlu1 %v123_v33, %s438_s26  ;;  %150 = vrot.lane.b32.xlu2 %v144_v35, %s439_s27 }
  0xa4   :  { %221 = vrot.lane.b32.xlu0 %v214_v38, %s442_s30 }
  0xa5   :  { %154 = vrot.lane.b32.xlu1 %v146_v37, %s439_s27  ;;  %173 = vrot.lane.b32.xlu2 %v167_v39, %s440_s28 }
  0xac   :  { %253 = vperm.xlu0 %363, %v242_v42  }
  0xad   :  { %177 = vrot.lane.b32.xlu1 %v169_v40, %s440_s28  ;;  %196 = vrot.lane.b32.xlu2 %v190_v41, %s441_s29 }
  0xb4   :  { %372 = vset.pattern.permute.xlu0 %v426_v0 }
  0xb5   :  { %200 = vrot.lane.b32.xlu1 %v192_v43, %s441_s29  ;;  %219 = vrot.lane.b32.xlu2 %v213_v44, %s442_s30 }
  0xbd   :  { %223 = vrot.lane.b32.xlu1 %v215_v45, %s442_s30  ;;  %235 = vperm.xlu2 %367, %v232_v46  }
  0xc5   :  { %246 = vperm.xlu1 %368, %v243_v47   ;;  %369 = vset.pattern.permute.xlu2 %v427_v1 }
  0xc6   :  { %263 = vperm.xlu2 %369, %v242_v42  }
  0xcd   :  { %370 = vset.pattern.permute.xlu1 %v428_v2 }
  0xce   :  { %273 = vperm.xlu1 %370, %v242_v42   ;;  %371 = vset.pattern.permute.xlu2 %v426_v0  ;;  %v44_v0 = vmul.f32 %v42_v49, %v488_v13 }
  0xcf   :  { %283 = vperm.xlu2 %371, %v242_v42  }
  0xd7   :  { %v63_v48 = vpop.permute.xlu2 %62  ;;  %v86_v51 = vpop.permute.xlu0 %85 }
  0xdf   :  { %v84_v50 = vpop.permute.xlu2 %83 }
  0xe0   :  { %v89_v22 = vsel %vm87_vm1, %v84_v50, %v86_v51 }
  0xe7   :  { %v105_v52 = vpop.permute.xlu2 %104 }
  0xee   :  { %v107_v54 = vpop.permute.xlu0 %106 }
  0xef   :  { %v59_v53 = vpop.permute.xlu1 %58  ;;  %v128_v56 = vpop.permute.xlu2 %127  ;;  %v111_v8 = vsel %vm110_vm2, %v105_v52, %v107_v54 }
  0xf6   :  { %v130_v57 = vpop.permute.xlu0 %129 }
  0xf7   :  { %v61_v55 = vpop.permute.xlu1 %60  ;;  %v151_v59 = vpop.permute.xlu2 %150  ;;  %v134_v12 = vsel %vm133_vm3, %v128_v56, %v130_v57 }
  0xf8   :  { %v65_v2 = vsel %vm64_vm0, %v59_v53, %v61_v55  ;;  %v66_v13 = vsel %vm64_vm0, %v61_v55, %v63_v48 }
  0xf9   :  { %v69_v4 = vadd.f32 %v65_v2, %v44_v0  ;;  %v70_v17 = vadd.f32 %v66_v13, %v45_v11 }
  0xfb   :  { %v93_v24 = vadd.f32 %v89_v22, %v70_v17 }
  0xfe   :  { %v153_v60 = vpop.permute.xlu0 %152 }
  0xff   :  { %v82_v58 = vpop.permute.xlu1 %81  ;;  %v174_v62 = vpop.permute.xlu2 %173  ;;  %v157_v18 = vsel %vm156_vm4, %v151_v59, %v153_v60 }
 0x100   :  { %v88_v3 = vsel %vm87_vm1, %v82_v58, %v84_v50 }
 0x101   :  { %v92_v5 = vadd.f32 %v88_v3, %v69_v4 }
 0x103   :  { %v115_v9 = vadd.f32 %v111_v8, %v92_v5 }
 0x105   :  { %v138_v15 = vadd.f32 %v134_v12, %v115_v9 }
 0x106   :  { %v176_v1 = vpop.permute.xlu0 %175 }
 0x107   :  { %v109_v61 = vpop.permute.xlu1 %108  ;;  %v197_v6 = vpop.permute.xlu2 %196  ;;  %v161_v20 = vadd.f32 %v157_v18, %v138_v15  ;;  %v180_v21 = vsel %vm179_vm5, %v174_v62, %v176_v1 }
 0x108   :  { %v112_v14 = vsel %vm110_vm2, %v107_v54, %v109_v61 }
 0x109   :  { %v184_v26 = vadd.f32 %v180_v21, %v161_v20  ;;  %v116_v28 = vadd.f32 %v112_v14, %v93_v24 }
 0x10e   :  { %v199_v10 = vpop.permute.xlu0 %198 }
 0x10f   :  { %v132_v63 = vpop.permute.xlu1 %131  ;;  %v220_v19 = vpop.permute.xlu2 %219  ;;  %v203_v25 = vsel %vm202_vm6, %v197_v6, %v199_v10 }
 0x110   :  { %v135_v27 = vsel %vm133_vm3, %v130_v57, %v132_v63  ;;  %v207_v31 = vadd.f32 %v203_v25, %v184_v26 }
 0x111   :  { %v139_v33 = vadd.f32 %v135_v27, %v116_v28 }
 0x116   :  { %v222_v23 = vpop.permute.xlu0 %221 }
 0x117   :  { %v155_v7 = vpop.permute.xlu1 %154  ;;  %v226_v29 = vsel %vm225_vm7, %v220_v19, %v222_v23  ;;  %v236_v37 = vpop.permute.xlu2 %235 }
 0x118   :  { %v158_v32 = vsel %vm156_vm4, %v153_v60, %v155_v7  ;;  %v230_v34 = vadd.f32 %v226_v29, %v207_v31 }
 0x119   :  { %v162_v36 = vadd.f32 %v158_v32, %v139_v33 }
 0x11a   :  { %v238_v40 = vadd.f32 %v236_v37, %v230_v34 }
 0x11c   :  { %v240_v45 = vmax.f32 %v238_v40, 0.0 }
 0x11e   :  { %v249_v49 = vperm.slane %v240_v45, 0  ;;  %v290_v50 = vperm.slane %v240_v45, 4  ;;  %v254_v51 = vpop.permute.xlu0 %253  ;;  %v260_v55 = vperm.slane %v240_v45, 1  ;;  %v296_v56 = vperm.slane %v240_v45, 5 }
 0x11f   :  { %v178_v16 = vpop.permute.xlu1 %177  ;;  %v280_v4 = vperm.slane %v240_v45, 3  ;;  %v308_v5 = vperm.slane %v240_v45, 7  ;;  %v270_v6 = vperm.slane %v240_v45, 2 }
 0x120   :  { %v181_v35 = vsel %vm179_vm5, %v176_v1, %v178_v16  ;;  %v264_v47 = vpop.permute.xlu2 %263  ;;  %v256_v59 = vmul.f32 %v254_v51, %v249_v49  ;;  %v292_v60 = vmul.f32 %v290_v50, %v254_v51  ;;  %v302_v16 = vperm.slane %v240_v45, 6 }
 0x121   :  { %v185_v39 = vadd.f32 %v181_v35, %v162_v36  ;;  %v266_v3 = vmul.f32 %v264_v47, %v260_v55  ;;  %v298_v7 = vmul.f32 %v296_v56, %v264_v47 }
 0x127   :  { %v201_v30 = vpop.permute.xlu1 %200 }
 0x128   :  { %v204_v38 = vsel %vm202_vm6, %v199_v10, %v201_v30 }
 0x129   :  { %v208_v41 = vadd.f32 %v204_v38, %v185_v39  ;;  %v284_v11 = vpop.permute.xlu2 %283 }
 0x12a   :  { %v286_v25 = vmul.f32 %v284_v11, %v280_v4  ;;  %v310_v26 = vmul.f32 %v308_v5, %v284_v11 }
 0x12f   :  { %v224_v42 = vpop.permute.xlu1 %223 }
 0x130   :  { %v227_v43 = vsel %vm225_vm7, %v222_v23, %v224_v42 }
 0x131   :  { %v231_v44 = vadd.f32 %v227_v43, %v208_v41 }
 0x133   :  { %v239_v46 = vadd.f32 %v236_v37, %v231_v44 }
 0x135   :  { %v241_v48 = vmax.f32 %v239_v46, 0.0 }
 0x137   :  { %v250_v52 = vperm.slane %v241_v48, 0  ;;  %v291_v53 = vperm.slane %v241_v48, 4  ;;  %v247_v54 = vpop.permute.xlu1 %246  ;;  %v261_v61 = vperm.slane %v241_v48, 1  ;;  %v297_v62 = vperm.slane %v241_v48, 5 }
 0x138   :  { %v258_v63 = vadd.f32 %v256_v59, %v247_v54  ;;  %v294_v1 = vadd.f32 %v292_v60, %v247_v54  ;;  %v281_v9 = vperm.slane %v241_v48, 3  ;;  %v271_v12 = vperm.slane %v241_v48, 2 }
 0x139   :  { %v257_v57 = vmul.f32 %v254_v51, %v250_v52  ;;  %v293_v58 = vmul.f32 %v291_v53, %v254_v51  ;;  %v267_v8 = vmul.f32 %v264_v47, %v261_v61  ;;  %v299_v10 = vmul.f32 %v297_v62, %v264_v47 }
 0x13a   :  { %v303_v13 = vperm.slane %v241_v48, 6  ;;  %v309_v15 = vperm.slane %v241_v48, 7  ;;  %v268_v20 = vadd.f32 %v266_v3, %v258_v63  ;;  %v300_v21 = vadd.f32 %v298_v7, %v294_v1 }
 0x13b   :  { %v259_v0 = vadd.f32 %v257_v57, %v247_v54  ;;  %v295_v2 = vadd.f32 %v293_v58, %v247_v54  ;;  %v287_v27 = vmul.f32 %v284_v11, %v281_v9 }
 0x13c   :  { %v311_v32 = vmul.f32 %v309_v15, %v284_v11 }
 0x13d   :  { %v269_v17 = vadd.f32 %v267_v8, %v259_v0  ;;  %v301_v18 = vadd.f32 %v299_v10, %v295_v2 }
 0x140   :  { %v274_v19 = vpop.permute.xlu1 %273 }
 0x141   :  { %v276_v22 = vmul.f32 %v274_v19, %v270_v6  ;;  %v277_v14 = vmul.f32 %v274_v19, %v271_v12  ;;  %v304_v23 = vmul.f32 %v302_v16, %v274_v19  ;;  %v305_v24 = vmul.f32 %v303_v13, %v274_v19 }
 0x143   :  { %v278_v28 = vadd.f32 %v276_v22, %v268_v20  ;;  %v279_v29 = vadd.f32 %v277_v14, %v269_v17  ;;  %v306_v30 = vadd.f32 %v304_v23, %v300_v21  ;;  %v307_v31 = vadd.f32 %v305_v24, %v301_v18 }
 0x145   :  { %v288_v33 = vadd.f32 %v286_v25, %v278_v28  ;;  %v289_v34 = vadd.f32 %v287_v27, %v279_v29  ;;  %v312_v35 = vadd.f32 %v310_v26, %v306_v30  ;;  %v313_v36 = vadd.f32 %v311_v32, %v307_v31 }
 0x147   :  { %314 = vst [vmem:[#allocation5] sm:$0xff] %v288_v33 }
 0x148   :  { %315 = vst [vmem:[#allocation5 + $0x8] sm:$0xff] %v289_v34 }
 0x149   :  { %316 = vst [vmem:[#allocation5 + $0x10] sm:$0xff] %v312_v35 }
 0x14a   :  { %317 = vst [vmem:[#allocation5 + $0x18] sm:$0xff] %v313_v36 }
 0x14b   :  { %330 = dma.vmem_to_hbm [thread:$0]  %s323_s4, 512, %s325_s13, [#allocation4], %s444_s14, %s444_s14, %s445_s15  }
 0x14c   :  { %423 = dma.done.wait [#allocation4], 512  }
 0x14d   :  { %424 = vsyncadd [#allocation4], 4294966784 }
 0x14e   :  { %335 = vsyncpa [#allocation3], 1 }
 0x14f   :  { %336 = vsyncpa [#allocation4], 1 }

</bundles_post_ra>
